<compile_context>
chip_gen: v6e
topology: v6e:2x2x1
jax: 0.10.0
libtpu: 0.0.40
codegen_flags: <defaults>
</compile_context>

<pallas_src>
import jax
import jax.numpy as jnp
from jax.experimental import pallas as pl
from jax.experimental.pallas import tpu as pltpu


def _make_kernel(offsets, tile_m, win):
    """offsets: static lane shifts (kh*Wp + kw) for each of the KH*KW taps."""
    n_taps = len(offsets)

    def kernel(alpha_ref, x_ref, w_ref, b_ref, o_ref):
        i = pl.program_id(0)
        base = pl.multiple_of(i * tile_m, tile_m)
        # One aligned load of this tile's window + halo; every tap view below
        # is a static lane-shifted slice of this value (no extra HBM traffic).
        xw = x_ref[:, pl.ds(base, tile_m + win)]            # (Cin, tile_m + win)

        acc = jnp.zeros((o_ref.shape[0], tile_m), jnp.float32)
        for s in range(n_taps):                              # unrolled: KH*KW taps
            off = offsets[s]
            acc += jnp.dot(w_ref[s], xw[:, off:off + tile_m],
                           preferred_element_type=jnp.float32)

        acc = acc + b_ref[...]                               # (Cout, 1) per-sublane bias
        alpha = alpha_ref[0]                                 # nn.PReLU() single parameter
        o_ref[...] = jnp.where(acc >= 0.0, acc, alpha * acc).astype(o_ref.dtype)

    return kernel


def conv_prelu_pallas(x_nchw, weight, bias, alpha, *, stride=1, padding=0, tile_m=512):
    assert tile_m % 128 == 0
    N, Cin, H, W = x_nchw.shape
    Cout, Cin_w, KH, KW = weight.shape
    assert Cin_w == Cin
    Hp, Wp = H + 2 * padding, W + 2 * padding
    Hout = (Hp - KH) // stride + 1
    Wout = (Wp - KW) // stride + 1

    # --- glue: channel-major flattened padded input  xflat[c, n*Hp*Wp + h*Wp + w]
    xp = jnp.pad(x_nchw, ((0, 0), (0, 0), (padding, padding), (padding, padding)))
    L = N * Hp * Wp
    xflat = jnp.transpose(xp, (1, 0, 2, 3)).reshape(Cin, L).astype(jnp.float32)

    num_tiles = pl.cdiv(L, tile_m)            # no "M % tile_m == 0" requirement
    Mw = num_tiles * tile_m
    max_shift = (KH - 1) * Wp + (KW - 1)
    win = ((max_shift + 127) // 128) * 128    # halo, rounded to a lane multiple
    xflat = jnp.pad(xflat, ((0, 0), (0, Mw + win - L)))       # zeros beyond L

    # tap weights: (KH*KW, Cout, Cin); tap s = kh*KW + kw pairs with shift kh*Wp + kw
    w_taps = jnp.transpose(weight, (2, 3, 0, 1)).reshape(KH * KW, Cout, Cin)
    w_taps = w_taps.astype(jnp.float32)
    offsets = tuple(kh * Wp + kw for kh in range(KH) for kw in range(KW))
    b_col = bias.reshape(Cout, 1).astype(jnp.float32)
    alpha_arr = jnp.asarray(alpha, jnp.float32).reshape(1)

    kernel = _make_kernel(offsets, tile_m, win)

    flops = 2 * Mw * Cin * KH * KW * Cout
    bytes_accessed = 4 * (xflat.size + w_taps.size + b_col.size + Cout * Mw)

    out_wide = pl.pallas_call(
        kernel,
        out_shape=jax.ShapeDtypeStruct((Cout, Mw), x_nchw.dtype),
        grid=(num_tiles,),
        in_specs=[
            pl.BlockSpec(memory_space=pltpu.MemorySpace.SMEM),        # PReLU alpha
            pl.BlockSpec((Cin, Mw + win), lambda i: (0, 0)),          # resident input
            pl.BlockSpec((KH * KW, Cout, Cin), lambda i: (0, 0, 0)),  # resident weights
            pl.BlockSpec((Cout, 1), lambda i: (0, 0)),                # bias column
        ],
        out_specs=pl.BlockSpec((Cout, tile_m), lambda i: (0, i)),     # lane-dense output
        compiler_params=pltpu.CompilerParams(
            dimension_semantics=("parallel",),
            vmem_limit_bytes=32 * 1024 * 1024),
        cost_estimate=pl.CostEstimate(flops=flops, transcendentals=0,
                                      bytes_accessed=bytes_accessed),
    )(alpha_arr, xflat, w_taps, b_col)

    # wide output covers every padded position; pick the valid (strided) ones.
    wide = out_wide[:, :L].reshape(Cout, N, Hp, Wp)
    y = wide[:, :, 0:(Hout - 1) * stride + 1:stride, 0:(Wout - 1) * stride + 1:stride]
    return jnp.transpose(y, (1, 0, 2, 3))                             # NCHW


def _reference(x, weight, bias, alpha, stride, padding):
    y = jax.lax.conv_general_dilated(
        x, weight, window_strides=(stride, stride),
        padding=[(padding, padding), (padding, padding)],
        dimension_numbers=("NCHW", "OIHW", "NCHW"))
    y = y + bias.reshape(1, -1, 1, 1)
    return jnp.where(y >= 0, y, alpha * y)


if __name__ == "__main__":
    # Module config: _ConvWithPReLU(in_channels=4, out_channels=8, kernel_size=3,
    #                               stride=1, padding=1)
    in_channels, out_channels, ksize, stride, padding = 4, 8, 3, 1, 1

    key = jax.random.PRNGKey(0)
    kw_key, kb_key, kx_key = jax.random.split(key, 3)

    # Deterministic kaiming_normal_(mode='fan_out', nonlinearity='leaky_relu')
    fan_out = out_channels * ksize * ksize
    gain = (2.0 / (1.0 + 0.01 ** 2)) ** 0.5
    std = gain / (fan_out ** 0.5)
    weight = std * jax.random.normal(kw_key, (out_channels, in_channels, ksize, ksize),
                                     jnp.float32)

    # Conv2d default bias init: U(-1/sqrt(fan_in), 1/sqrt(fan_in))
    fan_in = in_channels * ksize * ksize
    bound = 1.0 / (fan_in ** 0.5)
    bias = jax.random.uniform(kb_key, (out_channels,), jnp.float32, -bound, bound)

    alpha = 0.25  # nn.PReLU() default single parameter

    x = jax.random.normal(kx_key, (2, in_channels, 16, 16), jnp.float32)  # NCHW

    y = conv_prelu_pallas(x, weight, bias, alpha, stride=stride, padding=padding)
    y = jax.block_until_ready(y)

    y_ref = _reference(x, weight, bias, alpha, stride, padding)
    assert y.shape == y_ref.shape == (2, out_channels, 16, 16)
    assert jnp.allclose(y, y_ref, atol=2e-4, rtol=2e-4), "mismatch vs reference conv+PReLU"

    print("KERNEL_OK")
</pallas_src>

<mosaic_0001>
module attributes {stable_mosaic.version = 11 : i64} {
  func.func @kernel(%arg0: i32, %arg1: memref<1xf32, #tpu.memory_space<smem>>, %arg2: memref<4x1152xf32, #tpu.memory_space<vmem>>, %arg3: memref<9x8x4xf32, #tpu.memory_space<vmem>>, %arg4: memref<8x1xf32, #tpu.memory_space<vmem>>, %arg5: memref<8x512xf32, #tpu.memory_space<vmem>>) attributes {dimension_semantics = [#tpu.dimension_semantics<parallel>], iteration_bounds = array<i64: 2>, scalar_prefetch = 0 : i64, scratch_operands = 0 : i64, tpu.core_type = #tpu.core_type<tc>, window_params = [{transform_indices = @transform_0, window_bounds = array<i64: 1>}, {pipeline_mode = #tpu.pipeline_mode<synchronous>, transform_indices = @transform_1, window_bounds = array<i64: 4, 1152>}, {pipeline_mode = #tpu.pipeline_mode<synchronous>, transform_indices = @transform_2, window_bounds = array<i64: 9, 8, 4>}, {pipeline_mode = #tpu.pipeline_mode<synchronous>, transform_indices = @transform_3, window_bounds = array<i64: 8, 1>}, {transform_indices = @transform_4, window_bounds = array<i64: 8, 512>}]} {
    %c512_i32 = arith.constant 512 : i32
    %0 = arith.muli %arg0, %c512_i32 : i32
    %1 = tpu.assume_multiple %0, 512 : i32
    %c0 = arith.constant 0 : index
    %2 = arith.index_cast %1 : i32 to index
    %3 = vector.load %arg2[%c0, %2] : memref<4x1152xf32, #tpu.memory_space<vmem>>, vector<4x640xf32>
    %cst = arith.constant 0.000000e+00 : f32
    %4 = vector.broadcast %cst : f32 to vector<8x512xf32>
    %c0_0 = arith.constant 0 : index
    %c0_1 = arith.constant 0 : index
    %c0_2 = arith.constant 0 : index
    %5 = vector.load %arg3[%c0_0, %c0_1, %c0_2] : memref<9x8x4xf32, #tpu.memory_space<vmem>>, vector<1x8x4xf32>
    %6 = vector.shape_cast %5 : vector<1x8x4xf32> to vector<8x4xf32>
    %7 = vector.extract_strided_slice %3 {offsets = [0, 0], sizes = [4, 512], strides = [1, 1]} : vector<4x640xf32> to vector<4x512xf32>
    %cst_3 = arith.constant dense<0.000000e+00> : vector<8x512xf32>
    %8 = tpu.matmul %6, %7, %cst_3 {dimension_numbers = #tpu.dot_dimension_numbers<[1], [0], [0], [1], [0, 0, 1, 1], [], []>} : vector<8x4xf32>, vector<4x512xf32>, vector<8x512xf32> -> vector<8x512xf32>
    %9 = arith.addf %4, %8 : vector<8x512xf32>
    %c1 = arith.constant 1 : index
    %c0_4 = arith.constant 0 : index
    %c0_5 = arith.constant 0 : index
    %10 = vector.load %arg3[%c1, %c0_4, %c0_5] : memref<9x8x4xf32, #tpu.memory_space<vmem>>, vector<1x8x4xf32>
    %11 = vector.shape_cast %10 : vector<1x8x4xf32> to vector<8x4xf32>
    %12 = vector.extract_strided_slice %3 {offsets = [0, 1], sizes = [4, 512], strides = [1, 1]} : vector<4x640xf32> to vector<4x512xf32>
    %cst_6 = arith.constant dense<0.000000e+00> : vector<8x512xf32>
    %13 = tpu.matmul %11, %12, %cst_6 {dimension_numbers = #tpu.dot_dimension_numbers<[1], [0], [0], [1], [0, 0, 1, 1], [], []>} : vector<8x4xf32>, vector<4x512xf32>, vector<8x512xf32> -> vector<8x512xf32>
    %14 = arith.addf %9, %13 : vector<8x512xf32>
    %c2 = arith.constant 2 : index
    %c0_7 = arith.constant 0 : index
    %c0_8 = arith.constant 0 : index
    %15 = vector.load %arg3[%c2, %c0_7, %c0_8] : memref<9x8x4xf32, #tpu.memory_space<vmem>>, vector<1x8x4xf32>
    %16 = vector.shape_cast %15 : vector<1x8x4xf32> to vector<8x4xf32>
    %17 = vector.extract_strided_slice %3 {offsets = [0, 2], sizes = [4, 512], strides = [1, 1]} : vector<4x640xf32> to vector<4x512xf32>
    %cst_9 = arith.constant dense<0.000000e+00> : vector<8x512xf32>
    %18 = tpu.matmul %16, %17, %cst_9 {dimension_numbers = #tpu.dot_dimension_numbers<[1], [0], [0], [1], [0, 0, 1, 1], [], []>} : vector<8x4xf32>, vector<4x512xf32>, vector<8x512xf32> -> vector<8x512xf32>
    %19 = arith.addf %14, %18 : vector<8x512xf32>
    %c3 = arith.constant 3 : index
    %c0_10 = arith.constant 0 : index
    %c0_11 = arith.constant 0 : index
    %20 = vector.load %arg3[%c3, %c0_10, %c0_11] : memref<9x8x4xf32, #tpu.memory_space<vmem>>, vector<1x8x4xf32>
    %21 = vector.shape_cast %20 : vector<1x8x4xf32> to vector<8x4xf32>
    %22 = vector.extract_strided_slice %3 {offsets = [0, 18], sizes = [4, 512], strides = [1, 1]} : vector<4x640xf32> to vector<4x512xf32>
    %cst_12 = arith.constant dense<0.000000e+00> : vector<8x512xf32>
    %23 = tpu.matmul %21, %22, %cst_12 {dimension_numbers = #tpu.dot_dimension_numbers<[1], [0], [0], [1], [0, 0, 1, 1], [], []>} : vector<8x4xf32>, vector<4x512xf32>, vector<8x512xf32> -> vector<8x512xf32>
    %24 = arith.addf %19, %23 : vector<8x512xf32>
    %c4 = arith.constant 4 : index
    %c0_13 = arith.constant 0 : index
    %c0_14 = arith.constant 0 : index
    %25 = vector.load %arg3[%c4, %c0_13, %c0_14] : memref<9x8x4xf32, #tpu.memory_space<vmem>>, vector<1x8x4xf32>
    %26 = vector.shape_cast %25 : vector<1x8x4xf32> to vector<8x4xf32>
    %27 = vector.extract_strided_slice %3 {offsets = [0, 19], sizes = [4, 512], strides = [1, 1]} : vector<4x640xf32> to vector<4x512xf32>
    %cst_15 = arith.constant dense<0.000000e+00> : vector<8x512xf32>
    %28 = tpu.matmul %26, %27, %cst_15 {dimension_numbers = #tpu.dot_dimension_numbers<[1], [0], [0], [1], [0, 0, 1, 1], [], []>} : vector<8x4xf32>, vector<4x512xf32>, vector<8x512xf32> -> vector<8x512xf32>
    %29 = arith.addf %24, %28 : vector<8x512xf32>
    %c5 = arith.constant 5 : index
    %c0_16 = arith.constant 0 : index
    %c0_17 = arith.constant 0 : index
    %30 = vector.load %arg3[%c5, %c0_16, %c0_17] : memref<9x8x4xf32, #tpu.memory_space<vmem>>, vector<1x8x4xf32>
    %31 = vector.shape_cast %30 : vector<1x8x4xf32> to vector<8x4xf32>
    %32 = vector.extract_strided_slice %3 {offsets = [0, 20], sizes = [4, 512], strides = [1, 1]} : vector<4x640xf32> to vector<4x512xf32>
    %cst_18 = arith.constant dense<0.000000e+00> : vector<8x512xf32>
    %33 = tpu.matmul %31, %32, %cst_18 {dimension_numbers = #tpu.dot_dimension_numbers<[1], [0], [0], [1], [0, 0, 1, 1], [], []>} : vector<8x4xf32>, vector<4x512xf32>, vector<8x512xf32> -> vector<8x512xf32>
    %34 = arith.addf %29, %33 : vector<8x512xf32>
    %c6 = arith.constant 6 : index
    %c0_19 = arith.constant 0 : index
    %c0_20 = arith.constant 0 : index
    %35 = vector.load %arg3[%c6, %c0_19, %c0_20] : memref<9x8x4xf32, #tpu.memory_space<vmem>>, vector<1x8x4xf32>
    %36 = vector.shape_cast %35 : vector<1x8x4xf32> to vector<8x4xf32>
    %37 = vector.extract_strided_slice %3 {offsets = [0, 36], sizes = [4, 512], strides = [1, 1]} : vector<4x640xf32> to vector<4x512xf32>
    %cst_21 = arith.constant dense<0.000000e+00> : vector<8x512xf32>
    %38 = tpu.matmul %36, %37, %cst_21 {dimension_numbers = #tpu.dot_dimension_numbers<[1], [0], [0], [1], [0, 0, 1, 1], [], []>} : vector<8x4xf32>, vector<4x512xf32>, vector<8x512xf32> -> vector<8x512xf32>
    %39 = arith.addf %34, %38 : vector<8x512xf32>
    %c7 = arith.constant 7 : index
    %c0_22 = arith.constant 0 : index
    %c0_23 = arith.constant 0 : index
    %40 = vector.load %arg3[%c7, %c0_22, %c0_23] : memref<9x8x4xf32, #tpu.memory_space<vmem>>, vector<1x8x4xf32>
    %41 = vector.shape_cast %40 : vector<1x8x4xf32> to vector<8x4xf32>
    %42 = vector.extract_strided_slice %3 {offsets = [0, 37], sizes = [4, 512], strides = [1, 1]} : vector<4x640xf32> to vector<4x512xf32>
    %cst_24 = arith.constant dense<0.000000e+00> : vector<8x512xf32>
    %43 = tpu.matmul %41, %42, %cst_24 {dimension_numbers = #tpu.dot_dimension_numbers<[1], [0], [0], [1], [0, 0, 1, 1], [], []>} : vector<8x4xf32>, vector<4x512xf32>, vector<8x512xf32> -> vector<8x512xf32>
    %44 = arith.addf %39, %43 : vector<8x512xf32>
    %c8 = arith.constant 8 : index
    %c0_25 = arith.constant 0 : index
    %c0_26 = arith.constant 0 : index
    %45 = vector.load %arg3[%c8, %c0_25, %c0_26] : memref<9x8x4xf32, #tpu.memory_space<vmem>>, vector<1x8x4xf32>
    %46 = vector.shape_cast %45 : vector<1x8x4xf32> to vector<8x4xf32>
    %47 = vector.extract_strided_slice %3 {offsets = [0, 38], sizes = [4, 512], strides = [1, 1]} : vector<4x640xf32> to vector<4x512xf32>
    %cst_27 = arith.constant dense<0.000000e+00> : vector<8x512xf32>
    %48 = tpu.matmul %46, %47, %cst_27 {dimension_numbers = #tpu.dot_dimension_numbers<[1], [0], [0], [1], [0, 0, 1, 1], [], []>} : vector<8x4xf32>, vector<4x512xf32>, vector<8x512xf32> -> vector<8x512xf32>
    %49 = arith.addf %44, %48 : vector<8x512xf32>
    %c0_28 = arith.constant 0 : index
    %c0_29 = arith.constant 0 : index
    %50 = vector.load %arg4[%c0_28, %c0_29] : memref<8x1xf32, #tpu.memory_space<vmem>>, vector<8x1xf32>
    %51 = vector.broadcast %50 : vector<8x1xf32> to vector<8x512xf32>
    %52 = arith.addf %49, %51 : vector<8x512xf32>
    %c0_30 = arith.constant 0 : index
    %53 = memref.load %arg1[%c0_30] : memref<1xf32, #tpu.memory_space<smem>>
    %cst_31 = arith.constant 0.000000e+00 : f32
    %54 = vector.broadcast %cst_31 : f32 to vector<8x512xf32>
    %55 = arith.cmpf oge, %52, %54 : vector<8x512xf32>
    %56 = vector.broadcast %53 : f32 to vector<8x512xf32>
    %57 = arith.mulf %56, %52 : vector<8x512xf32>
    %58 = arith.select %55, %52, %57 : vector<8x512xi1>, vector<8x512xf32>
    %c0_32 = arith.constant 0 : index
    %c0_33 = arith.constant 0 : index
    %59 = vector.load %arg5[%c0_32, %c0_33] : memref<8x512xf32, #tpu.memory_space<vmem>>, vector<8x512xf32>
    tpu.vector_store %arg5[%c0_32, %c0_33], %58 {strides = array<i32>} : memref<8x512xf32, #tpu.memory_space<vmem>>, vector<8x512xf32>,
    return
  }
  func.func @transform_0(%arg0: i32) -> i32 {
    %c0_i32 = arith.constant 0 : i32
    %c0_i32_0 = arith.constant 0 : i32
    return %c0_i32 : i32
  }
  func.func @transform_1(%arg0: i32) -> (i32, i32) {
    %c0_i32 = arith.constant 0 : i32
    %c0_i32_0 = arith.constant 0 : i32
    %c0_i32_1 = arith.constant 0 : i32
    return %c0_i32, %c0_i32_0 : i32, i32
  }
  func.func @transform_2(%arg0: i32) -> (i32, i32, i32) {
    %c0_i32 = arith.constant 0 : i32
    %c0_i32_0 = arith.constant 0 : i32
    %c0_i32_1 = arith.constant 0 : i32
    %c0_i32_2 = arith.constant 0 : i32
    return %c0_i32, %c0_i32_0, %c0_i32_1 : i32, i32, i32
  }
  func.func @transform_3(%arg0: i32) -> (i32, i32) {
    %c0_i32 = arith.constant 0 : i32
    %c0_i32_0 = arith.constant 0 : i32
    %c0_i32_1 = arith.constant 0 : i32
    return %c0_i32, %c0_i32_0 : i32, i32
  }
  func.func @transform_4(%arg0: i32) -> (i32, i32) {
    %c0_i32 = arith.constant 0 : i32
    %c0_i32_0 = arith.constant 0 : i32
    return %c0_i32, %arg0 : i32, i32
  }
}

</mosaic_0001>

<bundles_post_ra>
// kernel: tpu_custom_call.1
= control target key start
LH: loop header
LB: loop body
LE: loop exit
PB: predicated region body
PF: predicated region fallthrough
CT: control target
= control target key end

     0   :  { %s2325_s0 = inlined_call_operand.<no memory space> [shape: f32[1], index: 0, kind: input, shape index: {}]   ;;  %s2326_s1 = inlined_call_operand.vmem [shape: f32[4,1152], index: 1, kind: input, shape index: {}]   ;;  %s2327_s2 = inlined_call_operand.vmem [shape: f32[9,8,4], index: 2, kind: input, shape index: {}]   ;;  %s2328_s3 = inlined_call_operand.vmem [shape: f32[8,1], index: 3, kind: input, shape index: {}]   ;;  %s2329_s4 = inlined_call_operand.hbm [shape: f32[8,1024], index: 4, kind: output, shape index: {}]  }
   0x1   :  { %9 = sst [smem:[#allocation2]] %s2325_s0 }
   0x2   :  { %10 = vsyncpa [#allocation4], 0 }
   0x3   :  { %12 = vsyncpa [#allocation4 + $0x1], 0  ;;  %s2054_s17 = smov 0   ;;  %s2056_s18 = smov 0  }
   0x4   :  { %s2058_s19 = smov 0   ;;  %s2060_s20 = smov 0  }
   0x5 LB: > { %s1826_s0 = sadd.s32 4294967295, %s2013_s20   ;;  %s1827_s21 = sadd.s32 4294967294, %s2013_s20   ;;  %s2013_s20 = sphi %s2060_s20, %s2335_s20   ;;  %s2009_s19 = sphi %s2058_s19, %s2334_s19   ;;  %s2005_s18 = sphi %s2056_s18, %s2333_s18   ;;  %s2001_s17 = sphi %s2054_s17, %s2332_s17  }
   0x6   : > { %s2077_s22 = sadd.s32 1, %s2013_s20   ;;  %s109_s23 = sadd.s32 1, %s2009_s19 }
   0x7   : > { %s106_s24 = ssub.s32 %s2013_s20, %s2077_s22  ;;  %p119_p0 = scmp.ne.s32.totalorder %s2009_s19, %s2005_s18 }
   0x8   : > { %p107_p1 = scmp.eq.s32.totalorder %s106_s24, 0  ;;  %p120_p2 = scmp.eq.s32.totalorder %s1826_s0, 1 }
   0x9   : > { %p125_p3 = scmp.ne.s32.totalorder %s2005_s18, %s2001_s17  ;;  %p126_p4 = scmp.eq.s32.totalorder %s1827_s21, 1 }
   0xa   : > { %s2087_s25 = scalar_select %p107_p1, %s2009_s19, %s109_s23  }
   0xb   : > { %p2089_p5 = por %p120_p2, %p119_p0  ;;  %p2093_p6 = por %p126_p4, %p125_p3 }
   0xc   : > { %p1829_p7 = scmp.ge.s32.totalorder %s2013_s20, 1  ;;  %p156_p8 = scmp.lt.s32.totalorder %s2013_s20, 3 }
   0xe   : > { %p157_p9 = pnand %p1829_p7, %p156_p8 }
   0xf   : > { %s2099_s28 = sshll.u32 (!%p157_p9), %s1826_s0, 9  ;;  %s2016_s8 = smov (!%p157_p9), 127  }
  0x10   : > { %160 = sbr.rel (%p157_p9) target bundleno = 432 (0x1b0), region = 36  ;;  %s179_s29 = sshra.s32 (!%p157_p9), %s2099_s28, 7 }
  0x11   : > { %s1832_s30 = sshll.u32 (!%p157_p9), %s179_s29, 2  ;;  %s2017_s9 = smov (!%p157_p9), 126  }
  0x12   : > { %s182_s7 = scalar_lea.vmem (!%p157_p9), %s2326_s1, %s1832_s30  ;;  %s2018_s10 = smov (!%p157_p9), 110  }
  0x13   : > { %s2019_s11 = smov (!%p157_p9), 109   ;;  %s2020_s12 = smov (!%p157_p9), 108  }
  0x14   : > { %s2021_s13 = smov (!%p157_p9), 92   ;;  %s2022_s14 = smov (!%p157_p9), 91  }
  0x15   : > { %v2015_v0 = vmov 0.0   ;;  %v185_v1 = vld [vmem:[%s182_s7 + $0x10] sm:$0xf]  ;;  %v2107_v2 = vld [vmem:[%s182_s7] sm:$0xff]  ;;  %v2109_v3 = vld [vmem:[%s182_s7 + $0x8] sm:$0xff]  ;;  %v2023_v6 = vmov 0   ;;  %s2282_s7 = scalar_lea.hbm %s2329_s4, %s2099_s28 }
  0x16   : > { %286 = vmatprep.mubr.f32.mxu0 %v2015_v0  ;;  %357 = vmatprep.mubr.f32.mxu1 %v2015_v0  ;;  %v2114_v4 = vcombine.high %v2109_v3, %v2109_v3  ;;  %v2118_v5 = vcombine.high %v2107_v2, %v2107_v2  ;;  %s2024_s15 = smov 90   ;;  %v1735_v7 = vld [vmem:[%s2328_s3] sm:$0xff]  ;;  %vm204_vm0 = vcmask 1039360   ;;  %vm213_vm1 = vcmask 1043456   ;;  %v1833_v15 = vld [vmem:[%s2327_s2 + $0x8] sm:$0xff]  ;;  %v1846_v27 = vld [vmem:[%s2327_s2 + $0x10] sm:$0xff] }
  0x17   : > { %202 = vrot.lane.b32.xlu1 %v185_v1, %s2016_s8  ;;  %198 = vrot.lane.b32.xlu0 %v2109_v3, %s2016_s8  ;;  %vm209_vm2 = vcmask 31744   ;;  %vm529_vm3 = vcmask 1031168   ;;  %v186_v19 = vld [vmem:[%s2327_s2] sm:$0xff]  ;;  %vm703_vm4 = vcmask 900096   ;;  %v1853_v36 = vld [vmem:[%s2327_s2 + $0x18] sm:$0xff]  ;;  %vm877_vm5 = vcmask 891904  }
  0x18   : > { %1950 = vset.pattern.permute.xlu0 %v2023_v6  ;;  %v1860_v47 = vld [vmem:[%s2327_s2 + $0x20] sm:$0xff]  ;;  %vm1051_vm6 = vcmask 883712   ;;  %v1867_v56 = vld [vmem:[%s2327_s2 + $0x28] sm:$0xff]  ;;  %vm1225_vm7 = vcmask 752640   ;;  %vm1399_vm8 = vcmask 744448   ;;  %vm1573_vm9 = vcmask 736256  }
  0x19   : > { %s1745_s21 = sld [smem:[#allocation2]]  ;;  %s174_s23 = sand.u32 1, %s2005_s18  }
  0x1a   : > { %s1830_s24 = sshll.u32 %s174_s23, 5 }
  0x1b   : > { %200 = vrot.lane.b32.xlu1 %v2114_v4, %s2016_s8  ;;  %196 = vrot.lane.b32.xlu0 %v2118_v5, %s2016_s8  ;;  %s176_s29 = scalar_lea.vmem [#allocation3], %s1830_s24 }
  0x1c   : > { %s1778_s30 = sshll.u32 %s176_s29, 4  ;;  %s2284_s30 = int_to_ptr.vmem [resolvable:$true] %s1778_s30 }
  0x1f   : > { %521 = vrot.lane.b32.xlu1 %v2118_v5, %s2017_s9  ;;  %194 = vrot.lane.b32.xlu0 %v2107_v2, %s2016_s8  ;;  %s1764_s8 = scalar_lea.sflag [#allocation4], %s174_s23 }
  0x23   : > { %525 = vrot.lane.b32.xlu1 %v2114_v4, %s2017_s9  ;;  %523 = vrot.lane.b32.xlu0 %v2109_v3, %s2017_s9 }
  0x27   : > { %519 = vrot.lane.b32.xlu1 %v2107_v2, %s2017_s9  ;;  %527 = vrot.lane.b32.xlu0 %v185_v1, %s2017_s9  ;;  %s1953_s9 = scalar_lea.vmem %s2284_s30, 512 }
  0x28   : > { %p1954_p10 = scmp.ne.s32.totalorder %s2284_s30, %s1953_s9 }
  0x2a   : > { %p1955_p11 = pnand %p1954_p10, %p2089_p5 }
  0x2b   : > { %697 = vrot.lane.b32.xlu1 %v2109_v3, %s2018_s10  ;;  %695 = vrot.lane.b32.xlu0 %v2118_v5, %s2018_s10 }
  0x2c   : > { %p1956_p12 = pneg %p1955_p11 }
  0x2f   : > { %701 = vrot.lane.b32.xlu1 %v185_v1, %s2018_s10  ;;  %699 = vrot.lane.b32.xlu0 %v2114_v4, %s2018_s10 }
  0x33   : > { %869 = vrot.lane.b32.xlu1 %v2118_v5, %s2019_s11  ;;  %693 = vrot.lane.b32.xlu0 %v2107_v2, %s2018_s10  ;;  %s2025_s10 = smov [#allocation3]  }
  0x37   : > { %873 = vrot.lane.b32.xlu1 %v2114_v4, %s2019_s11  ;;  %871 = vrot.lane.b32.xlu0 %v2109_v3, %s2019_s11 }
  0x3b   : > { %867 = vrot.lane.b32.xlu1 %v2107_v2, %s2019_s11  ;;  %875 = vrot.lane.b32.xlu0 %v185_v1, %s2019_s11  ;;  %s1957_s11 = sshll.u32 %s2025_s10, 4  ;;  %s1958_s11 = int_to_ptr.vmem [resolvable:$false] %s1957_s11 }
  0x3c   : > { %s1959_s28 = scalar_lea.vmem %s1958_s11, 1024  ;;  %p1960_p13 = scmp.lt.s32.totalorder %s2284_s30, %s1958_s11 }
  0x3d   : > { %p1961_p0 = scmp.lt.s32.totalorder %s1959_s28, %s1953_s9 }
  0x3f   : > { %1045 = vrot.lane.b32.xlu1 %v2109_v3, %s2020_s12  ;;  %1043 = vrot.lane.b32.xlu0 %v2118_v5, %s2020_s12  ;;  %p1962_p1 = por %p1961_p0, %p1960_p13 }
  0x41   : > { %p1963_p2 = pnand %p1962_p1, %p1956_p12 }
  0x43   : > { %1049 = vrot.lane.b32.xlu1 %v185_v1, %s2020_s12  ;;  %1047 = vrot.lane.b32.xlu0 %v2114_v4, %s2020_s12 }
  0x47   : > { %1217 = vrot.lane.b32.xlu1 %v2118_v5, %s2021_s13  ;;  %1041 = vrot.lane.b32.xlu0 %v2107_v2, %s2020_s12 }
  0x4b   : > { %1221 = vrot.lane.b32.xlu1 %v2114_v4, %s2021_s13  ;;  %1219 = vrot.lane.b32.xlu0 %v2109_v3, %s2021_s13 }
  0x4f   : > { %1215 = vrot.lane.b32.xlu1 %v2107_v2, %s2021_s13  ;;  %1223 = vrot.lane.b32.xlu0 %v185_v1, %s2021_s13 }
  0x53   : > { %1393 = vrot.lane.b32.xlu1 %v2109_v3, %s2022_s14  ;;  %1391 = vrot.lane.b32.xlu0 %v2118_v5, %s2022_s14 }
  0x57   : > { %1397 = vrot.lane.b32.xlu1 %v185_v1, %s2022_s14  ;;  %1395 = vrot.lane.b32.xlu0 %v2114_v4, %s2022_s14 }
  0x5b   : > { %1565 = vrot.lane.b32.xlu1 %v2118_v5, %s2024_s15  ;;  %1389 = vrot.lane.b32.xlu0 %v2107_v2, %s2022_s14 }
  0x5f   : > { %1569 = vrot.lane.b32.xlu1 %v2114_v4, %s2024_s15  ;;  %1567 = vrot.lane.b32.xlu0 %v2109_v3, %s2024_s15 }
  0x63   : > { %1563 = vrot.lane.b32.xlu1 %v2107_v2, %s2024_s15  ;;  %1571 = vrot.lane.b32.xlu0 %v185_v1, %s2024_s15 }
  0x67   : > { %1738 = vperm.xlu0 %1950, %v1735_v7  }
  0x89   : > { %v203_v8 = vpop.permute.xlu1 %202  ;;  %v199_v9 = vpop.permute.xlu0 %198 }
  0x8d   : > { %v201_v10 = vpop.permute.xlu1 %200  ;;  %v197_v11 = vpop.permute.xlu0 %196 }
  0x8e   : > { %v206_v12 = vsel %vm204_vm0, %v197_v11, %v199_v9  ;;  %v208_v13 = vsel %vm204_vm0, %v201_v10, %v203_v8  ;;  %v207_v14 = vsel %vm204_vm0, %v199_v9, %v201_v10 }
  0x8f   : > { %1834 = vmatprep.subr.msk.mxu0 %vm213_vm1, %v206_v12  ;;  %1837 = vmatprep.subr.msk.mxu1 %vm213_vm1, %v208_v13  ;;  %v1881_v13 = vld [vmem:[%s2327_s2 + $0x38] sm:$0xff] }
  0x90   : > { %1838 = vmatpush1.msk.msra.mxu1 %vm213_vm1, %v207_v14 }
  0x91   : > { %v522_v16 = vpop.permute.xlu1 %521  ;;  %v195_v17 = vpop.permute.xlu0 %194  ;;  %1839 = vmatmul.mubr.msk.f32.vlgmr.msra.gmra.mxu1 %vm209_vm2, %v1833_v15  ;;  %1843 = vmatprep.subr.msk.mxu1 %vm213_vm1, %v2114_v4 }
  0x92   : > { %v205_v18 = vsel %vm204_vm0, %v195_v17, %v197_v11  ;;  %1844 = vmatpush1.msk.msra.mxu1 %vm213_vm1, %v2109_v3  ;;  %510 = vmatprep.mubr.f32.mxu1 %v2015_v0 }
  0x93   : > { %1835 = vmatpush1.msk.msra.mxu0 %vm213_vm1, %v205_v18 }
  0x94   : > { %1840 = vmatprep.subr.msk.mxu0 %vm213_vm1, %v2118_v5  ;;  %1836 = vmatmul.mubr.msk.f32.vlgmr.msra.gmra.mxu0 %vm209_vm2, %v1833_v15 }
  0x95   : > { %v526_v20 = vpop.permute.xlu1 %525  ;;  %v524_v21 = vpop.permute.xlu0 %523  ;;  %1841 = vmatpush1.msk.msra.mxu0 %vm213_vm1, %v2107_v2  ;;  %439 = vmatprep.mubr.f32.mxu0 %v2015_v0  ;;  %v1874_v2 = vld [vmem:[%s2327_s2 + $0x30] sm:$0xff] }
  0x96   : > { %v531_v22 = vsel %vm529_vm3, %v522_v16, %v524_v21  ;;  %1845 = vmatmul.mubr.msk.f32.vlgmr.msra.gmra.mxu1 %vm209_vm2, %v186_v19  ;;  %v532_v28 = vsel %vm529_vm3, %v524_v21, %v526_v20 }
  0x97   : > { %1847 = vmatprep.subr.msk.mxu0 %vm213_vm1, %v531_v22  ;;  %680 = vmatprep.mubr.f32.mxu1 %v2015_v0  ;;  %v1888_v22 = vld [vmem:[%s2327_s2 + $0x40] sm:$0xff] }
  0x98   : > { %1842 = vmatmul.mubr.msk.f32.vlgmr.msra.gmra.mxu0 %vm209_vm2, %v186_v19 }
  0x99   : > { %v520_v23 = vpop.permute.xlu1 %519  ;;  %v528_v24 = vpop.permute.xlu0 %527  ;;  %609 = vmatprep.mubr.f32.mxu0 %v2015_v0 }
  0x9a   : > { %v530_v25 = vsel %vm529_vm3, %v520_v23, %v522_v16  ;;  %v533_v26 = vsel %vm529_vm3, %v526_v20, %v528_v24 }
  0x9b   : > { %1848 = vmatpush1.msk.msra.mxu0 %vm213_vm1, %v530_v25  ;;  %1850 = vmatprep.subr.msk.mxu1 %vm213_vm1, %v533_v26 }
  0x9c   : > { %1851 = vmatpush1.msk.msra.mxu1 %vm213_vm1, %v532_v28  ;;  %1849 = vmatmul.mubr.msk.f32.vlgmr.msra.gmra.mxu0 %vm209_vm2, %v1846_v27 }
  0x9d   : > { %v698_v29 = vpop.permute.xlu1 %697  ;;  %v696_v30 = vpop.permute.xlu0 %695  ;;  %1852 = vmatmul.mubr.msk.f32.vlgmr.msra.gmra.mxu1 %vm209_vm2, %v1846_v27  ;;  %783 = vmatprep.mubr.f32.mxu0 %v2015_v0 }
  0x9e   : > { %v705_v31 = vsel %vm703_vm4, %v696_v30, %v698_v29  ;;  %854 = vmatprep.mubr.f32.mxu1 %v2015_v0 }
  0x9f   : > { %1854 = vmatprep.subr.msk.mxu0 %vm213_vm1, %v705_v31 }
  0xa1   : > { %v702_v32 = vpop.permute.xlu1 %701  ;;  %v700_v33 = vpop.permute.xlu0 %699 }
  0xa2   : > { %v706_v34 = vsel %vm703_vm4, %v698_v29, %v700_v33  ;;  %v707_v35 = vsel %vm703_vm4, %v700_v33, %v702_v32 }
  0xa3   : > { %1857 = vmatprep.subr.msk.mxu1 %vm213_vm1, %v707_v35 }
  0xa4   : > { %1858 = vmatpush1.msk.msra.mxu1 %vm213_vm1, %v706_v34 }
  0xa5   : > { %v870_v37 = vpop.permute.xlu1 %869  ;;  %v694_v38 = vpop.permute.xlu0 %693  ;;  %1859 = vmatmul.mubr.msk.f32.vlgmr.msra.gmra.mxu1 %vm209_vm2, %v1853_v36 }
  0xa6   : > { %v704_v39 = vsel %vm703_vm4, %v694_v38, %v696_v30  ;;  %1028 = vmatprep.mubr.f32.mxu1 %v2015_v0 }
  0xa7   : > { %1855 = vmatpush1.msk.msra.mxu0 %vm213_vm1, %v704_v39 }
  0xa8   : > { %1856 = vmatmul.mubr.msk.f32.vlgmr.msra.gmra.mxu0 %vm209_vm2, %v1853_v36 }
  0xa9   : > { %v874_v40 = vpop.permute.xlu1 %873  ;;  %v872_v41 = vpop.permute.xlu0 %871  ;;  %957 = vmatprep.mubr.f32.mxu0 %v2015_v0 }
  0xaa   : > { %v879_v42 = vsel %vm877_vm5, %v870_v37, %v872_v41  ;;  %v880_v48 = vsel %vm877_vm5, %v872_v41, %v874_v40 }
  0xab   : > { %1861 = vmatprep.subr.msk.mxu0 %vm213_vm1, %v879_v42 }
  0xad   : > { %v868_v43 = vpop.permute.xlu1 %867  ;;  %v876_v44 = vpop.permute.xlu0 %875 }
  0xae   : > { %v878_v45 = vsel %vm877_vm5, %v868_v43, %v870_v37  ;;  %v881_v46 = vsel %vm877_vm5, %v874_v40, %v876_v44 }
  0xaf   : > { %1862 = vmatpush1.msk.msra.mxu0 %vm213_vm1, %v878_v45  ;;  %1864 = vmatprep.subr.msk.mxu1 %vm213_vm1, %v881_v46 }
  0xb0   : > { %1865 = vmatpush1.msk.msra.mxu1 %vm213_vm1, %v880_v48  ;;  %1863 = vmatmul.mubr.msk.f32.vlgmr.msra.gmra.mxu0 %vm209_vm2, %v1860_v47 }
  0xb1   : > { %v1046_v49 = vpop.permute.xlu1 %1045  ;;  %v1044_v50 = vpop.permute.xlu0 %1043  ;;  %1866 = vmatmul.mubr.msk.f32.vlgmr.msra.gmra.mxu1 %vm209_vm2, %v1860_v47  ;;  %1131 = vmatprep.mubr.f32.mxu0 %v2015_v0 }
  0xb2   : > { %v1053_v51 = vsel %vm1051_vm6, %v1044_v50, %v1046_v49  ;;  %1202 = vmatprep.mubr.f32.mxu1 %v2015_v0 }
  0xb3   : > { %1868 = vmatprep.subr.msk.mxu0 %vm213_vm1, %v1053_v51 }
  0xb5   : > { %v1050_v52 = vpop.permute.xlu1 %1049  ;;  %v1048_v53 = vpop.permute.xlu0 %1047 }
  0xb6   : > { %v1054_v54 = vsel %vm1051_vm6, %v1046_v49, %v1048_v53  ;;  %v1055_v55 = vsel %vm1051_vm6, %v1048_v53, %v1050_v52 }
  0xb7   : > { %1871 = vmatprep.subr.msk.mxu1 %vm213_vm1, %v1055_v55 }
  0xb8   : > { %1872 = vmatpush1.msk.msra.mxu1 %vm213_vm1, %v1054_v54 }
  0xb9   : > { %v1218_v57 = vpop.permute.xlu1 %1217  ;;  %v1042_v58 = vpop.permute.xlu0 %1041  ;;  %1873 = vmatmul.mubr.msk.f32.vlgmr.msra.gmra.mxu1 %vm209_vm2, %v1867_v56 }
  0xba   : > { %v1052_v59 = vsel %vm1051_vm6, %v1042_v58, %v1044_v50  ;;  %1376 = vmatprep.mubr.f32.mxu1 %v2015_v0 }
  0xbb   : > { %1869 = vmatpush1.msk.msra.mxu0 %vm213_vm1, %v1052_v59 }
  0xbc   : > { %1870 = vmatmul.mubr.msk.f32.vlgmr.msra.gmra.mxu0 %vm209_vm2, %v1867_v56 }
  0xbd   : > { %v1222_v60 = vpop.permute.xlu1 %1221  ;;  %v1220_v61 = vpop.permute.xlu0 %1219  ;;  %1305 = vmatprep.mubr.f32.mxu0 %v2015_v0 }
  0xbe   : > { %v1227_v62 = vsel %vm1225_vm7, %v1218_v57, %v1220_v61  ;;  %v1228_v5 = vsel %vm1225_vm7, %v1220_v61, %v1222_v60 }
  0xbf   : > { %1875 = vmatprep.subr.msk.mxu0 %vm213_vm1, %v1227_v62 }
  0xc1   : > { %v1216_v63 = vpop.permute.xlu1 %1215  ;;  %v1224_v1 = vpop.permute.xlu0 %1223 }
  0xc2   : > { %v1226_v3 = vsel %vm1225_vm7, %v1216_v63, %v1218_v57  ;;  %v1229_v4 = vsel %vm1225_vm7, %v1222_v60, %v1224_v1 }
  0xc3   : > { %1876 = vmatpush1.msk.msra.mxu0 %vm213_vm1, %v1226_v3  ;;  %1878 = vmatprep.subr.msk.mxu1 %vm213_vm1, %v1229_v4 }
  0xc4   : > { %1877 = vmatmul.mubr.msk.f32.vlgmr.msra.gmra.mxu0 %vm209_vm2, %v1874_v2  ;;  %1879 = vmatpush1.msk.msra.mxu1 %vm213_vm1, %v1228_v5 }
  0xc5   : > { %v1394_v6 = vpop.permute.xlu1 %1393  ;;  %1880 = vmatmul.mubr.msk.f32.vlgmr.msra.gmra.mxu1 %vm209_vm2, %v1874_v2  ;;  %v1392_v7 = vpop.permute.xlu0 %1391  ;;  %1479 = vmatprep.mubr.f32.mxu0 %v2015_v0 }
  0xc6   : > { %v1401_v8 = vsel %vm1399_vm8, %v1392_v7, %v1394_v6  ;;  %1550 = vmatprep.mubr.f32.mxu1 %v2015_v0 }
  0xc7   : > { %1882 = vmatprep.subr.msk.mxu0 %vm213_vm1, %v1401_v8 }
  0xc9   : > { %v1398_v9 = vpop.permute.xlu1 %1397  ;;  %v1396_v10 = vpop.permute.xlu0 %1395 }
  0xca   : > { %v1402_v11 = vsel %vm1399_vm8, %v1394_v6, %v1396_v10  ;;  %v1403_v12 = vsel %vm1399_vm8, %v1396_v10, %v1398_v9 }
  0xcb   : > { %1885 = vmatprep.subr.msk.mxu1 %vm213_vm1, %v1403_v12 }
  0xcc   : > { %1886 = vmatpush1.msk.msra.mxu1 %vm213_vm1, %v1402_v11 }
  0xcd   : > { %v1566_v14 = vpop.permute.xlu1 %1565  ;;  %1887 = vmatmul.mubr.msk.f32.vlgmr.msra.gmra.mxu1 %vm209_vm2, %v1881_v13  ;;  %v1390_v15 = vpop.permute.xlu0 %1389 }
  0xce   : > { %v1400_v16 = vsel %vm1399_vm8, %v1390_v15, %v1392_v7  ;;  %1724 = vmatprep.mubr.f32.mxu1 %v2015_v0 }
  0xcf   : > { %1883 = vmatpush1.msk.msra.mxu0 %vm213_vm1, %v1400_v16 }
  0xd0   : > { %1884 = vmatmul.mubr.msk.f32.vlgmr.msra.gmra.mxu0 %vm209_vm2, %v1881_v13 }
  0xd1   : > { %v1570_v17 = vpop.permute.xlu1 %1569  ;;  %v1568_v18 = vpop.permute.xlu0 %1567  ;;  %1653 = vmatprep.mubr.f32.mxu0 %v2015_v0 }
  0xd2   : > { %v1575_v19 = vsel %vm1573_vm9, %v1566_v14, %v1568_v18  ;;  %v1576_v25 = vsel %vm1573_vm9, %v1568_v18, %v1570_v17 }
  0xd3   : > { %1889 = vmatprep.subr.msk.mxu0 %vm213_vm1, %v1575_v19 }
  0xd5   : > { %v1564_v20 = vpop.permute.xlu1 %1563  ;;  %v1572_v21 = vpop.permute.xlu0 %1571 }
  0xd6   : > { %v1574_v23 = vsel %vm1573_vm9, %v1564_v20, %v1566_v14  ;;  %v1577_v24 = vsel %vm1573_vm9, %v1570_v17, %v1572_v21 }
  0xd7   : > { %1890 = vmatpush1.msk.msra.mxu0 %vm213_vm1, %v1574_v23  ;;  %1892 = vmatprep.subr.msk.mxu1 %vm213_vm1, %v1577_v24 }
  0xd8   : > { %1891 = vmatmul.mubr.msk.f32.vlgmr.msra.gmra.mxu0 %vm209_vm2, %v1888_v22  ;;  %1893 = vmatpush1.msk.msra.mxu1 %vm213_vm1, %v1576_v25 }
  0xd9   : > { %1894 = vmatmul.mubr.msk.f32.vlgmr.msra.gmra.mxu1 %vm209_vm2, %v1888_v22 }
  0xe2   : > { %v1739_v21 = vpop.permute.xlu0 %1738 }
 0x151   : > { %v359_v26 = vpop.f32.mrf.mxu1 }
 0x153   : > { %v361_v28 = vpop.f32.mrf.mxu1 }
 0x154   : > { %v288_v0 = vpop.f32.mrf.mxu0 }
 0x156   : > { %v290_v27 = vpop.f32.mrf.mxu0  ;;  %v512_v30 = vpop.f32.mrf.mxu1 }
 0x157   : > { %v513_v46 = vadd.f32 %v512_v30, %v359_v26 }
 0x158   : > { %v441_v29 = vpop.f32.mrf.mxu0  ;;  %v514_v32 = vpop.f32.mrf.mxu1 }
 0x159   : > { %v442_v44 = vadd.f32 %v441_v29, %v288_v0  ;;  %v515_v50 = vadd.f32 %v514_v32, %v361_v28 }
 0x15a   : > { %v443_v31 = vpop.f32.mrf.mxu0 }
 0x15b   : > { %v444_v48 = vadd.f32 %v443_v31, %v290_v27  ;;  %v1750_v27 = vstv %s1745_s21 }
 0x15c   : > { %v611_v33 = vpop.f32.mrf.mxu0 }
 0x15d   : > { %v682_v34 = vpop.f32.mrf.mxu1  ;;  %v687_v49 = vadd.f32 %v611_v33, %v442_v44 }
 0x15e   : > { %v613_v35 = vpop.f32.mrf.mxu0  ;;  %v689_v52 = vadd.f32 %v682_v34, %v513_v46 }
 0x15f   : > { %v684_v36 = vpop.f32.mrf.mxu1  ;;  %v688_v54 = vadd.f32 %v613_v35, %v444_v48 }
 0x160   : > { %v690_v56 = vadd.f32 %v684_v36, %v515_v50 }
 0x165   : > { %v856_v38 = vpop.f32.mrf.mxu1 }
 0x166   : > { %v863_v58 = vadd.f32 %v856_v38, %v689_v52 }
 0x167   : > { %v858_v40 = vpop.f32.mrf.mxu1 }
 0x168   : > { %v785_v37 = vpop.f32.mrf.mxu0  ;;  %v864_v63 = vadd.f32 %v858_v40, %v690_v56 }
 0x169   : > { %v861_v55 = vadd.f32 %v785_v37, %v687_v49 }
 0x16a   : > { %v787_v39 = vpop.f32.mrf.mxu0 }
 0x16b   : > { %v862_v60 = vadd.f32 %v787_v39, %v688_v54 }
 0x170   : > { %v959_v41 = vpop.f32.mrf.mxu0 }
 0x171   : > { %v1030_v42 = vpop.f32.mrf.mxu1  ;;  %v1035_v61 = vadd.f32 %v959_v41, %v861_v55 }
 0x172   : > { %v961_v43 = vpop.f32.mrf.mxu0  ;;  %v1037_v1 = vadd.f32 %v1030_v42, %v863_v58 }
 0x173   : > { %v1032_v45 = vpop.f32.mrf.mxu1  ;;  %v1036_v3 = vadd.f32 %v961_v43, %v862_v60 }
 0x174   : > { %v1038_v6 = vadd.f32 %v1032_v45, %v864_v63 }
 0x179   : > { %v1204_v51 = vpop.f32.mrf.mxu1 }
 0x17a   : > { %v1211_v9 = vadd.f32 %v1204_v51, %v1037_v1 }
 0x17b   : > { %v1206_v57 = vpop.f32.mrf.mxu1 }
 0x17c   : > { %v1133_v47 = vpop.f32.mrf.mxu0  ;;  %v1212_v12 = vadd.f32 %v1206_v57, %v1038_v6 }
 0x17d   : > { %v1209_v4 = vadd.f32 %v1133_v47, %v1035_v61 }
 0x17e   : > { %v1135_v53 = vpop.f32.mrf.mxu0 }
 0x17f   : > { %v1210_v10 = vadd.f32 %v1135_v53, %v1036_v3 }
 0x184   : > { %v1307_v59 = vpop.f32.mrf.mxu0 }
 0x185   : > { %v1378_v62 = vpop.f32.mrf.mxu1  ;;  %v1383_v11 = vadd.f32 %v1307_v59, %v1209_v4 }
 0x186   : > { %v1309_v2 = vpop.f32.mrf.mxu0  ;;  %v1385_v13 = vadd.f32 %v1378_v62, %v1211_v9 }
 0x187   : > { %v1380_v5 = vpop.f32.mrf.mxu1  ;;  %v1384_v15 = vadd.f32 %v1309_v2, %v1210_v10 }
 0x188   : > { %v1386_v18 = vadd.f32 %v1380_v5, %v1212_v12 }
 0x18d   : > { %v1552_v8 = vpop.f32.mrf.mxu1 }
 0x18e   : > { %v1559_v19 = vadd.f32 %v1552_v8, %v1385_v13 }
 0x18f   : > { %v1554_v16 = vpop.f32.mrf.mxu1 }
 0x190   : > { %v1481_v7 = vpop.f32.mrf.mxu0  ;;  %v1560_v25 = vadd.f32 %v1554_v16, %v1386_v18 }
 0x191   : > { %v1557_v17 = vadd.f32 %v1481_v7, %v1383_v11 }
 0x192   : > { %v1483_v14 = vpop.f32.mrf.mxu0 }
 0x193   : > { %v1558_v22 = vadd.f32 %v1483_v14, %v1384_v15 }
 0x198   : > { %v1655_v20 = vpop.f32.mrf.mxu0 }
 0x199   : > { %v1731_v23 = vadd.f32 %v1655_v20, %v1557_v17  ;;  %v1726_v24 = vpop.f32.mrf.mxu1 }
 0x19a   : > { %v1733_v0 = vadd.f32 %v1726_v24, %v1559_v19  ;;  %v1657_v26 = vpop.f32.mrf.mxu0 }
 0x19b   : > { %v1732_v28 = vadd.f32 %v1657_v26, %v1558_v22  ;;  %v1741_v29 = vadd.f32 %v1739_v21, %v1731_v23  ;;  %v1728_v30 = vpop.f32.mrf.mxu1 }
 0x19c   : > { %v1743_v31 = vadd.f32 %v1739_v21, %v1733_v0  ;;  %v1734_v32 = vadd.f32 %v1728_v30, %v1560_v25 }
 0x19d   : > { %v1742_v33 = vadd.f32 %v1739_v21, %v1732_v28  ;;  %vm1746_vm10 = vcmp.ge.f32.partialorder %v1741_v29, 0.0  ;;  %v1751_v34 = vmul.f32 %v1750_v27, %v1741_v29 }
 0x19e   : > { %vm1748_vm11 = vcmp.ge.f32.partialorder %v1743_v31, 0.0  ;;  %v1753_v35 = vmul.f32 %v1750_v27, %v1743_v31  ;;  %v1744_v36 = vadd.f32 %v1739_v21, %v1734_v32 }
 0x19f   : > { %vm1747_vm12 = vcmp.ge.f32.partialorder %v1742_v33, 0.0  ;;  %v1752_v37 = vmul.f32 %v1750_v27, %v1742_v33  ;;  %v1755_v38 = vsel %vm1746_vm10, %v1741_v29, %v1751_v34 }
 0x1a0   : > { %v1757_v39 = vsel %vm1748_vm11, %v1743_v31, %v1753_v35  ;;  %1759 = vst [vmem:[%s176_s29] sm:$0xff] %v1755_v38  ;;  %vm1749_vm13 = vcmp.ge.f32.partialorder %v1744_v36, 0.0  ;;  %v1754_v40 = vmul.f32 %v1750_v27, %v1744_v36 }
 0x1a1   : > { %v1756_v41 = vsel %vm1747_vm12, %v1742_v33, %v1752_v37  ;;  %1761 = vst [vmem:[%s176_s29 + $0x10] sm:$0xff] %v1757_v39 }
 0x1a2   : > { %1760 = vst [vmem:[%s176_s29 + $0x8] sm:$0xff] %v1756_v41  ;;  %v1758_v42 = vsel %vm1749_vm13, %v1744_v36, %v1754_v40 }
 0x1a3   : > { %1762 = vst [vmem:[%s176_s29 + $0x18] sm:$0xff] %v1758_v42 }
 0x1a4   : > { %1966 = shalt.err (!%p1963_p2)
}
 0x1a5   : > { %s1967_s12 = scalar_lea.hbm %s2282_s7, 512  ;;  %s1971_s15 = scalar_lea.hbm %s2329_s4, 1024 }
 0x1a6   : > { %p1968_p3 = scmp.ne.s32.totalorder %s2282_s7, %s1967_s12  ;;  %p1972_p8 = scmp.lt.s32.totalorder %s2282_s7, %s2329_s4 }
 0x1a7   : > { %p1973_p9 = scmp.lt.s32.totalorder %s1971_s15, %s1967_s12 }
 0x1a8   : > { %p1969_p4 = pnand %p1968_p3, %p2089_p5 }
 0x1a9   : > { %p1974_p10 = por %p1973_p9, %p1972_p8 }
 0x1aa   : > { %p1970_p7 = pneg %p1969_p4 }
 0x1ac   : > { %p1975_p11 = pnand %p1974_p10, %p1970_p7 }
 0x1ae   : > { %1978 = shalt.err (!%p1975_p11)
}
 0x1af   : > { %1901 = dma.vmem_to_hbm [thread:$0]  (%p2089_p5), %s2284_s30, 512, %s2282_s7, %s1764_s8  }
 0x1b0 PF: > { %p1907_p12 = scmp.ge.s32.totalorder %s2013_s20, 2  ;;  %s1790_s21 = sand.u32 1, %s2001_s17  }
 0x1b1   : > { %s1791_s23 = scalar_lea.sflag [#allocation4], %s1790_s21 }
 0x1b2   : > { %p1904_p13 = pnand %p1907_p12, %p2093_p6 }
 0x1b4   : > { %p1905_p0 = pneg %p1904_p13 }
 0x1b6   : > { %1996 = dma.done.wait (%p1905_p0), %s1791_s23, 512  }
 0x1b7   : > { %1998 = vsyncadd (%p1905_p0), %s1791_s23, 4294966784  ;;  %p15_p1 = scmp.ge.s32.totalorder %s2077_s22, 4   ;;  %s2332_s17 = smov %s2005_s18 }
 0x1b8   : > { %s2333_s18 = smov %s2009_s19  ;;  %s2334_s19 = smov %s2087_s25 }
 0x1b9   : > { %s2335_s20 = smov %s2077_s22  ;;  %17 = sbr.rel (!%p15_p1) target bundleno = 5 (0x5), region = 77 }
 0x1be   :  { %1796 = vsyncpa [#allocation4], 1 }
 0x1bf   :  { %1798 = vsyncpa [#allocation4 + $0x1], 1 }

</bundles_post_ra>
